<compile_context>
chip_gen: v6e
topology: v6e:2x2x1
jax: 0.10.0
libtpu: 0.0.40
codegen_flags: <defaults>
</compile_context>

<pallas_src>
import functools
import math

import jax
import jax.numpy as jnp
from jax.experimental import pallas as pl
from jax.experimental.pallas import tpu as pltpu


# ----------------------------- Pallas kernels ------------------------------

def _bimap_kernel(x_ref, w_ref, o_ref, *, nf, k, n, bt):
    """Optimized BiMap: W X W^T for all filters / all batch items of the tile.

    x_ref: (n, bt*n)     bf16  -- bt symmetric inputs packed along the lane axis
    w_ref: (nf*k, n)     bf16  -- resident filters, row index = (filter, out_row)
    o_ref: (bt, nf*k*k)  f32   -- flat, lane-dense output block
    """
    w = w_ref[...]                                               # (nf*k, n) bf16
    # Stage 1: ONE lane-dense MXU matmul per grid step  (M=nf*k, K=n, N=bt*n).
    wx = jnp.dot(w, x_ref[...], preferred_element_type=jnp.float32)   # (nf*k, bt*n)
    # Stage 2: (W X) W^T, batched over filters (3-D dot_general, batch dim = f).
    # wx3[f, i*bt + b, m] == (W_f X_b)[i, m]  (pure row-major reindex of wx).
    wx3 = wx.astype(jnp.bfloat16).reshape(nf, k * bt, n)
    w3 = w.reshape(nf, k, n)
    y = jax.lax.dot_general(
        wx3, w3, (((2,), (2,)), ((0,), (0,))),
        preferred_element_type=jnp.float32)                      # (nf, k*bt, k)
    # Repack to the flat lane-dense layout  out[b, f*k*k + i*k + j].
    y = y.reshape(nf, k, bt, k)                                  # [f, i, b, j]
    y = jnp.transpose(y, (2, 0, 1, 3))                           # [b, f, i, j]
    o_ref[...] = y.reshape(bt, nf * k * k)


def _bimap_kernel_fallback(x_ref, w_ref, o_ref):
    """Conservative BiMap (previously validated ops only, no lane-crossing
    relayouts).  Used only if Mosaic rejects the optimized kernel."""
    nf, k, n = w_ref.shape
    bt = x_ref.shape[0]
    w = w_ref[...]                                               # bf16
    wr = w.reshape(nf * k, n)
    for bi in range(bt):                                         # static unroll
        wx = jnp.dot(wr, x_ref[bi], preferred_element_type=jnp.float32)
        y = jnp.einsum('fin,fjn->fij',
                       wx.reshape(nf, k, n).astype(jnp.bfloat16), w,
                       preferred_element_type=jnp.float32)
        o_ref[bi] = y


def _eig_recon_kernel(lam_ref, v_ref, o_ref, *, floor, take_log, flat_out):
    """LogEig / ReEig reconstruction: V diag(g(lam)) V^T.

    lam_ref: (bt, nf, k)     f32   (size-1 dim dropped)
    v_ref  : (bt, nf, k, k)  bf16  (host-cast)
    o_ref  : (bt, nf*k*k) f32 if flat_out else (bt, nf, k, k) f32
    """
    bt, nf, k, _ = v_ref.shape
    g = bt * nf
    lam = jnp.maximum(lam_ref[...], floor)                       # f32 clamp/floor
    if take_log:
        lam = jnp.log(lam)                                       # f32 on the EUP
    # Single narrow cast, then a bf16 VPU multiply (cheaper on v5e than f32+pack).
    scale = lam.astype(jnp.bfloat16).reshape(g, 1, k)
    v = v_ref[...].reshape(g, k, k)                              # leading merge only
    y = jnp.einsum('gij,gkj->gik', v * scale, v,
                   preferred_element_type=jnp.float32)           # V diag V^T
    if flat_out:
        o_ref[...] = y.reshape(bt, nf * k * k)                   # lane-dense store
    else:
        o_ref[...] = y.reshape(bt, nf, k, k)                     # conservative store


# --------------------------- tiling / VMEM policy ---------------------------

def _vmem_limit_bytes():
    """Generation-aware VMEM limit, well above the 16/32 MiB scoped defaults."""
    cap = 128 * 1024 * 1024
    try:
        cap = int(pltpu.get_tpu_info().vmem_capacity_bytes)
    except Exception:   # noqa: BLE001 -- keep a safe default if the query fails
        pass
    if cap <= 64 * 1024 * 1024:
        # v7x-class part (64 MiB physical): keep explicit headroom.
        return max(16 * 1024 * 1024, min(44 * 1024 * 1024, cap - 16 * 1024 * 1024))
    # v5e / v6e (128 MiB physical): use most of it so larger batch tiles fit.
    return 96 * 1024 * 1024


def _tile_vmem_bytes(bt, n, nf, k):
    """Per-grid-step VMEM footprint in BYTES (double-buffering + temporaries)."""
    nfk = nf * k
    out_elems = bt * nfk * k
    bimap = (
        2 * (n * bt * n) * 2          # Xp block (bf16), double-buffered
        + 2 * (nfk * n) * 2           # W (bf16); counted double-buffered even
                                      #   though Buffered(1) is requested
        + 2 * out_elems * 4           # flat f32 output block, double-buffered
        + (nfk * bt * n) * (4 + 2 + 2)  # wx f32 + bf16 cast + lane-split copy
        + out_elems * (4 + 4 + 4)     # stage-2 result + transpose + flatten copies
    )
    recon = (
        2 * (bt * nfk) * 4            # eigenvalues (f32)
        + 2 * out_elems * 2           # V block (bf16)
        + 2 * out_elems * 4           # flat f32 output block
        + out_elems * (2 + 2 + 4 + 4)  # scale + scaled V + matmul result + flatten
    )
    return max(bimap, recon)


def _pick_batch_tile(b, n, nf, k, budget_bytes):
    """Choose (Bt, grid, padded_b).

      * Bt*n is a multiple of 128 (lane-dense X block) and Bt a multiple of 8
        (sublane-aligned flat output block), so every BlockSpec obeys the
        (8,128) rule.
      * Largest such Bt whose footprint (with 25% slack for (8,128) layout
        padding and Mosaic internal scratch) fits the budget.
      * Keep >= 2 grid steps whenever the batch can actually be split, so both
        TensorCores of a v7x chip get work under dimension_semantics=("parallel",).
      * Bt need not divide b: the batch is padded (with identity matrices).
    """
    step = math.lcm(8, 128 // math.gcd(n, 128))
    b_aligned = -(-b // step) * step
    bt = step                                 # smallest legal tile
    while True:
        cand = bt + step
        if cand > b_aligned:
            break
        if (_tile_vmem_bytes(cand, n, nf, k) * 5) // 4 + (1 << 20) > budget_bytes:
            break
        bt = cand
    if b > step:                              # enough real work for >= 2 steps
        bt = min(bt, max(step, (b // 2) // step * step))
    grid = -(-b // bt)
    return bt, grid, grid * bt


def _try_in_order(*thunks):
    """Return the first thunk that traces/compiles successfully.

    The optimized kernels rely on Mosaic in-kernel relayouts (lane-splitting
    reshapes / minor-preserving transposes) and pl.Buffered(1); if the installed
    Mosaic rejects any of them we degrade to the previously validated
    formulation so the forward pass always runs.
    """
    err = None
    for thunk in thunks:
        try:
            return thunk()
        except Exception as e:      # noqa: BLE001 -- fall through to safer variant
            err = e
    raise err


# ------------------------------ pallas wrappers -----------------------------

def _bimap(Xf, W, *, bt, grid, vmem_limit):
    padded_b, n, _ = Xf.shape
    nf, k, _ = W.shape
    flops = 2 * padded_b * nf * k * n * (n + k)
    out_bytes = padded_b * nf * k * k * 4
    cparams = pltpu.CompilerParams(dimension_semantics=("parallel",),
                                   vmem_limit_bytes=vmem_limit)

    def call_primary(w_spec):
        # Host-side layout / dtype plumbing (cheap XLA ops): X is symmetric, so
        # [n, b, n] -> [n, b*n] lets the kernel run one lane-dense matmul/step;
        # bf16 casts here halve HBM->VMEM DMA bytes (accumulation stays f32).
        Xp = jnp.transpose(Xf, (1, 0, 2)).reshape(n, padded_b * n).astype(jnp.bfloat16)
        Wr = W.reshape(nf * k, n).astype(jnp.bfloat16)
        kern = functools.partial(_bimap_kernel, nf=nf, k=k, n=n, bt=bt)
        y = pl.pallas_call(
            kern,
            out_shape=jax.ShapeDtypeStruct((padded_b, nf * k * k), jnp.float32),
            grid=(grid,),
            in_specs=[
                pl.BlockSpec((n, bt * n), lambda i: (0, i)),
                w_spec,                                    # W resident across grid
            ],
            out_specs=pl.BlockSpec((bt, nf * k * k), lambda i: (i, 0)),
            compiler_params=cparams,
            cost_estimate=pl.CostEstimate(
                flops=flops, transcendentals=0,
                bytes_accessed=Xp.size * 2 + Wr.size * 2 + out_bytes),
        )(Xp, Wr)
        return y.reshape(padded_b, nf, k, k)               # free reshape (XLA side)

    def call_fallback():
        Xb = Xf.astype(jnp.bfloat16)
        Wb = W.astype(jnp.bfloat16)
        return pl.pallas_call(
            _bimap_kernel_fallback,
            out_shape=jax.ShapeDtypeStruct((padded_b, nf, k, k), jnp.float32),
            grid=(grid,),
            in_specs=[
                pl.BlockSpec((bt, n, n), lambda i: (i, 0, 0)),
                pl.BlockSpec((nf, k, n), lambda i: (0, 0, 0)),
            ],
            out_specs=pl.BlockSpec((bt, nf, k, k), lambda i: (i, 0, 0, 0)),
            compiler_params=cparams,
            cost_estimate=pl.CostEstimate(
                flops=flops, transcendentals=0,
                bytes_accessed=Xf.size * 2 + W.size * 2 + out_bytes),
        )(Xb, Wb)

    return _try_in_order(
        # 1) resident W, single-buffered (halves its VMEM footprint)
        lambda: call_primary(pl.BlockSpec((nf * k, n), lambda i: (0, 0),
                                          pipeline_mode=pl.Buffered(1))),
        # 2) same kernel, default (double) buffering for W
        lambda: call_primary(pl.BlockSpec((nf * k, n), lambda i: (0, 0))),
        # 3) conservative, previously validated formulation
        call_fallback,
    )


def _eig_recon(lam, Vb, *, bt, grid, take_log, floor, vmem_limit):
    padded_b, nf, k, _ = Vb.shape
    flops = 2 * padded_b * nf * k * k * k + padded_b * nf * k * k
    trans = padded_b * nf * k if take_log else 0
    bytes_accessed = lam.size * 4 + Vb.size * 2 + padded_b * nf * k * k * 4
    cparams = pltpu.CompilerParams(dimension_semantics=("parallel",),
                                   vmem_limit_bytes=vmem_limit)

    def call(flat_out):
        kern = functools.partial(_eig_recon_kernel, floor=floor,
                                 take_log=take_log, flat_out=flat_out)
        if flat_out:
            out_shape = jax.ShapeDtypeStruct((padded_b, nf * k * k), jnp.float32)
            out_spec = pl.BlockSpec((bt, nf * k * k), lambda i: (i, 0))
        else:
            out_shape = jax.ShapeDtypeStruct((padded_b, nf, k, k), jnp.float32)
            out_spec = pl.BlockSpec((bt, nf, k, k), lambda i: (i, 0, 0, 0))
        y = pl.pallas_call(
            kern,
            out_shape=out_shape,
            grid=(grid,),
            in_specs=[
                pl.BlockSpec((bt, nf, k), lambda i: (i, 0, 0)),
                pl.BlockSpec((bt, nf, k, k), lambda i: (i, 0, 0, 0)),
            ],
            out_specs=out_spec,
            compiler_params=cparams,
            cost_estimate=pl.CostEstimate(flops=flops, transcendentals=trans,
                                          bytes_accessed=bytes_accessed),
        )(lam, Vb)
        return y.reshape(padded_b, nf, k, k)

    return _try_in_order(lambda: call(True), lambda: call(False))


# ------------------------------ forward pass --------------------------------

def spdnet_forward(X, W, eig_thresh=1e-4, log_euclid=True, log_eps=1e-6):
    """Forward pass of SPDNet.

    X: [n, n] or [b, n, n] SPD matrices.
    W: [nf, k, n] stacked Stiefel filters (k = dim_out < n = dim_in).
    Returns: [b, nf, k, k].
    """
    if X.ndim == 2:
        X = X[None]
    X = X.astype(jnp.float32)
    W = W.astype(jnp.float32)

    b, n, _ = X.shape
    nf, k, _ = W.shape

    vmem_limit = _vmem_limit_bytes()
    bt, grid, padded_b = _pick_batch_tile(b, n, nf, k, (vmem_limit * 7) // 10)

    # Pad the batch with identity matrices (harmless SPD inputs) so the tile
    # does not have to divide b; padded rows are sliced off at the end.
    if padded_b != b:
        pad = jnp.broadcast_to(jnp.eye(n, dtype=jnp.float32),
                               (padded_b - b, n, n))
        Xf = jnp.concatenate([X, pad], axis=0)
    else:
        Xf = X

    # BiMap: W X W^T (Pallas kernel).
    Y = _bimap(Xf, W, bt=bt, grid=grid, vmem_limit=vmem_limit)   # [pb, nf, k, k]
    # bf16 matmul noise can leave Y slightly asymmetric; symmetrize before eigh.
    Y = 0.5 * (Y + jnp.swapaxes(Y, -1, -2))

    # Symmetric eigendecomposition (plain JAX -- no Pallas eigensolver).
    lam, V = jnp.linalg.eigh(Y)                     # lam [pb,nf,k], V [pb,nf,k,k]

    floor = float(log_eps) if log_euclid else float(eig_thresh)
    out = _eig_recon(lam, V.astype(jnp.bfloat16), bt=bt, grid=grid,
                     take_log=bool(log_euclid), floor=floor,
                     vmem_limit=vmem_limit)         # [pb, nf, k, k]
    return out[:b]


# ------------------------------- main ---------------------------------------

if __name__ == "__main__":
    dim_in, dim_out, num_filters, batch = 16, 8, 2, 2

    key = jax.random.PRNGKey(0)
    k_w, k_x = jax.random.split(key)

    # Deterministic filter init mimicking SPDNet.__init__:
    # rows of the eigenvector matrix of a centered random Gram matrix.
    w_keys = jax.random.split(k_w, num_filters)
    filters = []
    for i in range(num_filters):
        W_dat = jax.random.uniform(
            w_keys[i], (dim_in, dim_in ** 2), dtype=jnp.float32)
        W_dat = W_dat - W_dat.mean(axis=1, keepdims=True)
        G = W_dat @ W_dat.T
        _, Vg = jnp.linalg.eigh(G)
        filters.append(Vg[:dim_out])                           # [k, n], orthonormal rows
    W = jnp.stack(filters)                                     # [nf, k, n]

    # Deterministic SPD inputs: A A^T + 0.1 I.
    A = jax.random.normal(k_x, (batch, dim_in, 2 * dim_in), dtype=jnp.float32)
    X = jnp.einsum("bij,bkj->bik", A, A) + 0.1 * jnp.eye(dim_in, dtype=jnp.float32)

    out = spdnet_forward(X, W, log_euclid=True)                # [b, nf, k, k]
    jax.block_until_ready(out)
    assert out.shape == (batch, num_filters, dim_out, dim_out)
    print("KERNEL_OK")
</pallas_src>

<mosaic_0001>
module attributes {stable_mosaic.version = 11 : i64} {
  func.func @_bimap_kernel(%arg0: i32, %arg1: memref<16x128xbf16, #tpu.memory_space<vmem>>, %arg2: memref<16x16xbf16, #tpu.memory_space<vmem>>, %arg3: memref<8x128xf32, #tpu.memory_space<vmem>>) attributes {dimension_semantics = [#tpu.dimension_semantics<parallel>], iteration_bounds = array<i64: 1>, scalar_prefetch = 0 : i64, scratch_operands = 0 : i64, tpu.core_type = #tpu.core_type<tc>, window_params = [{transform_indices = @transform_0, window_bounds = array<i64: 16, 128>}, {pipeline_mode = #tpu.pipeline_mode<synchronous>, transform_indices = @transform_1, window_bounds = array<i64: 16, 16>}, {transform_indices = @transform_2, window_bounds = array<i64: 8, 128>}]} {
    %c0 = arith.constant 0 : index
    %c0_0 = arith.constant 0 : index
    %0 = vector.load %arg2[%c0, %c0_0] : memref<16x16xbf16, #tpu.memory_space<vmem>>, vector<16x16xbf16>
    %c0_1 = arith.constant 0 : index
    %c0_2 = arith.constant 0 : index
    %1 = vector.load %arg1[%c0_1, %c0_2] : memref<16x128xbf16, #tpu.memory_space<vmem>>, vector<16x128xbf16>
    %cst = arith.constant dense<0.000000e+00> : vector<16x128xf32>
    %2 = tpu.matmul %0, %1, %cst {dimension_numbers = #tpu.dot_dimension_numbers<[1], [0], [0], [1], [0, 0, 1, 1], [], []>} : vector<16x16xbf16>, vector<16x128xbf16>, vector<16x128xf32> -> vector<16x128xf32>
    %3 = arith.truncf %2 : vector<16x128xf32> to vector<16x128xbf16>
    %4 = vector.shape_cast %3 : vector<16x128xbf16> to vector<2x64x16xbf16>
    %5 = vector.shape_cast %0 : vector<16x16xbf16> to vector<2x8x16xbf16>
    %cst_3 = arith.constant dense<0.000000e+00> : vector<2x64x8xf32>
    %6 = tpu.matmul %4, %5, %cst_3 {dimension_numbers = #tpu.dot_dimension_numbers<[2], [2], [1], [1], [0, 0, 0, 1, 1, 1], [0], [0]>} : vector<2x64x16xbf16>, vector<2x8x16xbf16>, vector<2x64x8xf32> -> vector<2x64x8xf32>
    %7 = vector.shape_cast %6 : vector<2x64x8xf32> to vector<2x8x8x8xf32>
    %8 = tpu.transpose %7, [2, 0, 1, 3] : vector<2x8x8x8xf32> -> vector<8x2x8x8xf32>
    %9 = vector.shape_cast %8 : vector<8x2x8x8xf32> to vector<8x128xf32>
    %c0_4 = arith.constant 0 : index
    %c0_5 = arith.constant 0 : index
    %10 = vector.load %arg3[%c0_4, %c0_5] : memref<8x128xf32, #tpu.memory_space<vmem>>, vector<8x128xf32>
    tpu.vector_store %arg3[%c0_4, %c0_5], %9 {strides = array<i32>} : memref<8x128xf32, #tpu.memory_space<vmem>>, vector<8x128xf32>,
    return
  }
  func.func @transform_0(%arg0: i32) -> (i32, i32) {
    %c0_i32 = arith.constant 0 : i32
    %c0_i32_0 = arith.constant 0 : i32
    return %c0_i32, %arg0 : i32, i32
  }
  func.func @transform_1(%arg0: i32) -> (i32, i32) {
    %c0_i32 = arith.constant 0 : i32
    %c0_i32_0 = arith.constant 0 : i32
    %c0_i32_1 = arith.constant 0 : i32
    return %c0_i32, %c0_i32_0 : i32, i32
  }
  func.func @transform_2(%arg0: i32) -> (i32, i32) {
    %c0_i32 = arith.constant 0 : i32
    %c0_i32_0 = arith.constant 0 : i32
    return %arg0, %c0_i32 : i32, i32
  }
}

module attributes {stable_mosaic.version = 11 : i64} {
  func.func @_bimap_kernel(%arg0: i32, %arg1: memref<16x128xbf16, #tpu.memory_space<vmem>>, %arg2: memref<16x16xbf16, #tpu.memory_space<vmem>>, %arg3: memref<8x128xf32, #tpu.memory_space<vmem>>) attributes {dimension_semantics = [#tpu.dimension_semantics<parallel>], iteration_bounds = array<i64: 1>, scalar_prefetch = 0 : i64, scratch_operands = 0 : i64, tpu.core_type = #tpu.core_type<tc>, window_params = [{transform_indices = @transform_0, window_bounds = array<i64: 16, 128>}, {pipeline_mode = #tpu.pipeline_mode<synchronous>, transform_indices = @transform_1, window_bounds = array<i64: 16, 16>}, {transform_indices = @transform_2, window_bounds = array<i64: 8, 128>}]} {
    %c0 = arith.constant 0 : index
    %c0_0 = arith.constant 0 : index
    %0 = vector.load %arg2[%c0, %c0_0] : memref<16x16xbf16, #tpu.memory_space<vmem>>, vector<16x16xbf16>
    %c0_1 = arith.constant 0 : index
    %c0_2 = arith.constant 0 : index
    %1 = vector.load %arg1[%c0_1, %c0_2] : memref<16x128xbf16, #tpu.memory_space<vmem>>, vector<16x128xbf16>
    %cst = arith.constant dense<0.000000e+00> : vector<16x128xf32>
    %2 = tpu.matmul %0, %1, %cst {dimension_numbers = #tpu.dot_dimension_numbers<[1], [0], [0], [1], [0, 0, 1, 1], [], []>} : vector<16x16xbf16>, vector<16x128xbf16>, vector<16x128xf32> -> vector<16x128xf32>
    %3 = arith.truncf %2 : vector<16x128xf32> to vector<16x128xbf16>
    %4 = vector.shape_cast %3 : vector<16x128xbf16> to vector<2x64x16xbf16>
    %5 = vector.shape_cast %0 : vector<16x16xbf16> to vector<2x8x16xbf16>
    %cst_3 = arith.constant dense<0.000000e+00> : vector<2x64x8xf32>
    %6 = tpu.matmul %4, %5, %cst_3 {dimension_numbers = #tpu.dot_dimension_numbers<[2], [2], [1], [1], [0, 0, 0, 1, 1, 1], [0], [0]>} : vector<2x64x16xbf16>, vector<2x8x16xbf16>, vector<2x64x8xf32> -> vector<2x64x8xf32>
    %7 = vector.shape_cast %6 : vector<2x64x8xf32> to vector<2x8x8x8xf32>
    %8 = tpu.transpose %7, [2, 0, 1, 3] : vector<2x8x8x8xf32> -> vector<8x2x8x8xf32>
    %9 = vector.shape_cast %8 : vector<8x2x8x8xf32> to vector<8x128xf32>
    %c0_4 = arith.constant 0 : index
    %c0_5 = arith.constant 0 : index
    %10 = vector.load %arg3[%c0_4, %c0_5] : memref<8x128xf32, #tpu.memory_space<vmem>>, vector<8x128xf32>
    tpu.vector_store %arg3[%c0_4, %c0_5], %9 {strides = array<i32>} : memref<8x128xf32, #tpu.memory_space<vmem>>, vector<8x128xf32>,
    return
  }
  func.func @transform_0(%arg0: i32) -> (i32, i32) {
    %c0_i32 = arith.constant 0 : i32
    %c0_i32_0 = arith.constant 0 : i32
    return %c0_i32, %arg0 : i32, i32
  }
  func.func @transform_1(%arg0: i32) -> (i32, i32) {
    %c0_i32 = arith.constant 0 : i32
    %c0_i32_0 = arith.constant 0 : i32
    %c0_i32_1 = arith.constant 0 : i32
    return %c0_i32, %c0_i32_0 : i32, i32
  }
  func.func @transform_2(%arg0: i32) -> (i32, i32) {
    %c0_i32 = arith.constant 0 : i32
    %c0_i32_0 = arith.constant 0 : i32
    return %arg0, %c0_i32 : i32, i32
  }
}

module attributes {stable_mosaic.version = 11 : i64} {
  func.func @_bimap_kernel_fallback(%arg0: i32, %arg1: memref<8x16x16xbf16, #tpu.memory_space<vmem>>, %arg2: memref<2x8x16xbf16, #tpu.memory_space<vmem>>, %arg3: memref<8x2x8x8xf32, #tpu.memory_space<vmem>>) attributes {dimension_semantics = [#tpu.dimension_semantics<parallel>], iteration_bounds = array<i64: 1>, scalar_prefetch = 0 : i64, scratch_operands = 0 : i64, tpu.core_type = #tpu.core_type<tc>, window_params = [{transform_indices = @transform_0, window_bounds = array<i64: 8, 16, 16>}, {pipeline_mode = #tpu.pipeline_mode<synchronous>, transform_indices = @transform_1, window_bounds = array<i64: 2, 8, 16>}, {transform_indices = @transform_2, window_bounds = array<i64: 8, 2, 8, 8>}]} {
    %c0 = arith.constant 0 : index
    %c0_0 = arith.constant 0 : index
    %c0_1 = arith.constant 0 : index
    %0 = vector.load %arg2[%c0, %c0_0, %c0_1] : memref<2x8x16xbf16, #tpu.memory_space<vmem>>, vector<2x8x16xbf16>
    %1 = vector.shape_cast %0 : vector<2x8x16xbf16> to vector<16x16xbf16>
    %c0_2 = arith.constant 0 : index
    %c0_3 = arith.constant 0 : index
    %c0_4 = arith.constant 0 : index
    %2 = vector.load %arg1[%c0_2, %c0_3, %c0_4] : memref<8x16x16xbf16, #tpu.memory_space<vmem>>, vector<1x16x16xbf16>
    %3 = vector.shape_cast %2 : vector<1x16x16xbf16> to vector<16x16xbf16>
    %cst = arith.constant dense<0.000000e+00> : vector<16x16xf32>
    %4 = tpu.matmul %1, %3, %cst {dimension_numbers = #tpu.dot_dimension_numbers<[1], [0], [0], [1], [0, 0, 1, 1], [], []>} : vector<16x16xbf16>, vector<16x16xbf16>, vector<16x16xf32> -> vector<16x16xf32>
    %5 = vector.shape_cast %4 : vector<16x16xf32> to vector<2x8x16xf32>
    %6 = arith.truncf %5 : vector<2x8x16xf32> to vector<2x8x16xbf16>
    "tpu.trace_start"() <{level = 10 : i32, message = "fin,fjn->fij"}> : () -> ()
    %cst_5 = arith.constant dense<0.000000e+00> : vector<2x8x8xf32>
    %7 = tpu.matmul %6, %0, %cst_5 {dimension_numbers = #tpu.dot_dimension_numbers<[2], [2], [1], [1], [0, 0, 0, 1, 1, 1], [0], [0]>} : vector<2x8x16xbf16>, vector<2x8x16xbf16>, vector<2x8x8xf32> -> vector<2x8x8xf32>
    "tpu.trace_stop"() : () -> ()
    %c0_6 = arith.constant 0 : index
    %c0_7 = arith.constant 0 : index
    %c0_8 = arith.constant 0 : index
    %c0_9 = arith.constant 0 : index
    %8 = vector.load %arg3[%c0_6, %c0_7, %c0_8, %c0_9] : memref<8x2x8x8xf32, #tpu.memory_space<vmem>>, vector<1x2x8x8xf32>
    %9 = vector.shape_cast %8 : vector<1x2x8x8xf32> to vector<2x8x8xf32>
    %10 = vector.shape_cast %7 : vector<2x8x8xf32> to vector<1x2x8x8xf32>
    tpu.vector_store %arg3[%c0_6, %c0_7, %c0_8, %c0_9], %10 {strides = array<i32>} : memref<8x2x8x8xf32, #tpu.memory_space<vmem>>, vector<1x2x8x8xf32>,
    %c1 = arith.constant 1 : index
    %c0_10 = arith.constant 0 : index
    %c0_11 = arith.constant 0 : index
    %11 = vector.load %arg1[%c1, %c0_10, %c0_11] : memref<8x16x16xbf16, #tpu.memory_space<vmem>>, vector<1x16x16xbf16>
    %12 = vector.shape_cast %11 : vector<1x16x16xbf16> to vector<16x16xbf16>
    %cst_12 = arith.constant dense<0.000000e+00> : vector<16x16xf32>
    %13 = tpu.matmul %1, %12, %cst_12 {dimension_numbers = #tpu.dot_dimension_numbers<[1], [0], [0], [1], [0, 0, 1, 1], [], []>} : vector<16x16xbf16>, vector<16x16xbf16>, vector<16x16xf32> -> vector<16x16xf32>
    %14 = vector.shape_cast %13 : vector<16x16xf32> to vector<2x8x16xf32>
    %15 = arith.truncf %14 : vector<2x8x16xf32> to vector<2x8x16xbf16>
    "tpu.trace_start"() <{level = 10 : i32, message = "fin,fjn->fij"}> : () -> ()
    %cst_13 = arith.constant dense<0.000000e+00> : vector<2x8x8xf32>
    %16 = tpu.matmul %15, %0, %cst_13 {dimension_numbers = #tpu.dot_dimension_numbers<[2], [2], [1], [1], [0, 0, 0, 1, 1, 1], [0], [0]>} : vector<2x8x16xbf16>, vector<2x8x16xbf16>, vector<2x8x8xf32> -> vector<2x8x8xf32>
    "tpu.trace_stop"() : () -> ()
    %c1_14 = arith.constant 1 : index
    %c0_15 = arith.constant 0 : index
    %c0_16 = arith.constant 0 : index
    %c0_17 = arith.constant 0 : index
    %17 = vector.load %arg3[%c1_14, %c0_15, %c0_16, %c0_17] : memref<8x2x8x8xf32, #tpu.memory_space<vmem>>, vector<1x2x8x8xf32>
    %18 = vector.shape_cast %17 : vector<1x2x8x8xf32> to vector<2x8x8xf32>
    %19 = vector.shape_cast %16 : vector<2x8x8xf32> to vector<1x2x8x8xf32>
    tpu.vector_store %arg3[%c1_14, %c0_15, %c0_16, %c0_17], %19 {strides = array<i32>} : memref<8x2x8x8xf32, #tpu.memory_space<vmem>>, vector<1x2x8x8xf32>,
    %c2 = arith.constant 2 : index
    %c0_18 = arith.constant 0 : index
    %c0_19 = arith.constant 0 : index
    %20 = vector.load %arg1[%c2, %c0_18, %c0_19] : memref<8x16x16xbf16, #tpu.memory_space<vmem>>, vector<1x16x16xbf16>
    %21 = vector.shape_cast %20 : vector<1x16x16xbf16> to vector<16x16xbf16>
    %cst_20 = arith.constant dense<0.000000e+00> : vector<16x16xf32>
    %22 = tpu.matmul %1, %21, %cst_20 {dimension_numbers = #tpu.dot_dimension_numbers<[1], [0], [0], [1], [0, 0, 1, 1], [], []>} : vector<16x16xbf16>, vector<16x16xbf16>, vector<16x16xf32> -> vector<16x16xf32>
    %23 = vector.shape_cast %22 : vector<16x16xf32> to vector<2x8x16xf32>
    %24 = arith.truncf %23 : vector<2x8x16xf32> to vector<2x8x16xbf16>
    "tpu.trace_start"() <{level = 10 : i32, message = "fin,fjn->fij"}> : () -> ()
    %cst_21 = arith.constant dense<0.000000e+00> : vector<2x8x8xf32>
    %25 = tpu.matmul %24, %0, %cst_21 {dimension_numbers = #tpu.dot_dimension_numbers<[2], [2], [1], [1], [0, 0, 0, 1, 1, 1], [0], [0]>} : vector<2x8x16xbf16>, vector<2x8x16xbf16>, vector<2x8x8xf32> -> vector<2x8x8xf32>
    "tpu.trace_stop"() : () -> ()
    %c2_22 = arith.constant 2 : index
    %c0_23 = arith.constant 0 : index
    %c0_24 = arith.constant 0 : index
    %c0_25 = arith.constant 0 : index
    %26 = vector.load %arg3[%c2_22, %c0_23, %c0_24, %c0_25] : memref<8x2x8x8xf32, #tpu.memory_space<vmem>>, vector<1x2x8x8xf32>
    %27 = vector.shape_cast %26 : vector<1x2x8x8xf32> to vector<2x8x8xf32>
    %28 = vector.shape_cast %25 : vector<2x8x8xf32> to vector<1x2x8x8xf32>
    tpu.vector_store %arg3[%c2_22, %c0_23, %c0_24, %c0_25], %28 {strides = array<i32>} : memref<8x2x8x8xf32, #tpu.memory_space<vmem>>, vector<1x2x8x8xf32>,
    %c3 = arith.constant 3 : index
    %c0_26 = arith.constant 0 : index
    %c0_27 = arith.constant 0 : index
    %29 = vector.load %arg1[%c3, %c0_26, %c0_27] : memref<8x16x16xbf16, #tpu.memory_space<vmem>>, vector<1x16x16xbf16>
    %30 = vector.shape_cast %29 : vector<1x16x16xbf16> to vector<16x16xbf16>
    %cst_28 = arith.constant dense<0.000000e+00> : vector<16x16xf32>
    %31 = tpu.matmul %1, %30, %cst_28 {dimension_numbers = #tpu.dot_dimension_numbers<[1], [0], [0], [1], [0, 0, 1, 1], [], []>} : vector<16x16xbf16>, vector<16x16xbf16>, vector<16x16xf32> -> vector<16x16xf32>
    %32 = vector.shape_cast %31 : vector<16x16xf32> to vector<2x8x16xf32>
    %33 = arith.truncf %32 : vector<2x8x16xf32> to vector<2x8x16xbf16>
    "tpu.trace_start"() <{level = 10 : i32, message = "fin,fjn->fij"}> : () -> ()
    %cst_29 = arith.constant dense<0.000000e+00> : vector<2x8x8xf32>
    %34 = tpu.matmul %33, %0, %cst_29 {dimension_numbers = #tpu.dot_dimension_numbers<[2], [2], [1], [1], [0, 0, 0, 1, 1, 1], [0], [0]>} : vector<2x8x16xbf16>, vector<2x8x16xbf16>, vector<2x8x8xf32> -> vector<2x8x8xf32>
    "tpu.trace_stop"() : () -> ()
    %c3_30 = arith.constant 3 : index
    %c0_31 = arith.constant 0 : index
    %c0_32 = arith.constant 0 : index
    %c0_33 = arith.constant 0 : index
    %35 = vector.load %arg3[%c3_30, %c0_31, %c0_32, %c0_33] : memref<8x2x8x8xf32, #tpu.memory_space<vmem>>, vector<1x2x8x8xf32>
    %36 = vector.shape_cast %35 : vector<1x2x8x8xf32> to vector<2x8x8xf32>
    %37 = vector.shape_cast %34 : vector<2x8x8xf32> to vector<1x2x8x8xf32>
    tpu.vector_store %arg3[%c3_30, %c0_31, %c0_32, %c0_33], %37 {strides = array<i32>} : memref<8x2x8x8xf32, #tpu.memory_space<vmem>>, vector<1x2x8x8xf32>,
    %c4 = arith.constant 4 : index
    %c0_34 = arith.constant 0 : index
    %c0_35 = arith.constant 0 : index
    %38 = vector.load %arg1[%c4, %c0_34, %c0_35] : memref<8x16x16xbf16, #tpu.memory_space<vmem>>, vector<1x16x16xbf16>
    %39 = vector.shape_cast %38 : vector<1x16x16xbf16> to vector<16x16xbf16>
    %cst_36 = arith.constant dense<0.000000e+00> : vector<16x16xf32>
    %40 = tpu.matmul %1, %39, %cst_36 {dimension_numbers = #tpu.dot_dimension_numbers<[1], [0], [0], [1], [0, 0, 1, 1], [], []>} : vector<16x16xbf16>, vector<16x16xbf16>, vector<16x16xf32> -> vector<16x16xf32>
    %41 = vector.shape_cast %40 : vector<16x16xf32> to vector<2x8x16xf32>
    %42 = arith.truncf %41 : vector<2x8x16xf32> to vector<2x8x16xbf16>
    "tpu.trace_start"() <{level = 10 : i32, message = "fin,fjn->fij"}> : () -> ()
    %cst_37 = arith.constant dense<0.000000e+00> : vector<2x8x8xf32>
    %43 = tpu.matmul %42, %0, %cst_37 {dimension_numbers = #tpu.dot_dimension_numbers<[2], [2], [1], [1], [0, 0, 0, 1, 1, 1], [0], [0]>} : vector<2x8x16xbf16>, vector<2x8x16xbf16>, vector<2x8x8xf32> -> vector<2x8x8xf32>
    "tpu.trace_stop"() : () -> ()
    %c4_38 = arith.constant 4 : index
    %c0_39 = arith.constant 0 : index
    %c0_40 = arith.constant 0 : index
    %c0_41 = arith.constant 0 : index
    %44 = vector.load %arg3[%c4_38, %c0_39, %c0_40, %c0_41] : memref<8x2x8x8xf32, #tpu.memory_space<vmem>>, vector<1x2x8x8xf32>
    %45 = vector.shape_cast %44 : vector<1x2x8x8xf32> to vector<2x8x8xf32>
    %46 = vector.shape_cast %43 : vector<2x8x8xf32> to vector<1x2x8x8xf32>
    tpu.vector_store %arg3[%c4_38, %c0_39, %c0_40, %c0_41], %46 {strides = array<i32>} : memref<8x2x8x8xf32, #tpu.memory_space<vmem>>, vector<1x2x8x8xf32>,
    %c5 = arith.constant 5 : index
    %c0_42 = arith.constant 0 : index
    %c0_43 = arith.constant 0 : index
    %47 = vector.load %arg1[%c5, %c0_42, %c0_43] : memref<8x16x16xbf16, #tpu.memory_space<vmem>>, vector<1x16x16xbf16>
    %48 = vector.shape_cast %47 : vector<1x16x16xbf16> to vector<16x16xbf16>
    %cst_44 = arith.constant dense<0.000000e+00> : vector<16x16xf32>
    %49 = tpu.matmul %1, %48, %cst_44 {dimension_numbers = #tpu.dot_dimension_numbers<[1], [0], [0], [1], [0, 0, 1, 1], [], []>} : vector<16x16xbf16>, vector<16x16xbf16>, vector<16x16xf32> -> vector<16x16xf32>
    %50 = vector.shape_cast %49 : vector<16x16xf32> to vector<2x8x16xf32>
    %51 = arith.truncf %50 : vector<2x8x16xf32> to vector<2x8x16xbf16>
    "tpu.trace_start"() <{level = 10 : i32, message = "fin,fjn->fij"}> : () -> ()
    %cst_45 = arith.constant dense<0.000000e+00> : vector<2x8x8xf32>
    %52 = tpu.matmul %51, %0, %cst_45 {dimension_numbers = #tpu.dot_dimension_numbers<[2], [2], [1], [1], [0, 0, 0, 1, 1, 1], [0], [0]>} : vector<2x8x16xbf16>, vector<2x8x16xbf16>, vector<2x8x8xf32> -> vector<2x8x8xf32>
    "tpu.trace_stop"() : () -> ()
    %c5_46 = arith.constant 5 : index
    %c0_47 = arith.constant 0 : index
    %c0_48 = arith.constant 0 : index
    %c0_49 = arith.constant 0 : index
    %53 = vector.load %arg3[%c5_46, %c0_47, %c0_48, %c0_49] : memref<8x2x8x8xf32, #tpu.memory_space<vmem>>, vector<1x2x8x8xf32>
    %54 = vector.shape_cast %53 : vector<1x2x8x8xf32> to vector<2x8x8xf32>
    %55 = vector.shape_cast %52 : vector<2x8x8xf32> to vector<1x2x8x8xf32>
    tpu.vector_store %arg3[%c5_46, %c0_47, %c0_48, %c0_49], %55 {strides = array<i32>} : memref<8x2x8x8xf32, #tpu.memory_space<vmem>>, vector<1x2x8x8xf32>,
    %c6 = arith.constant 6 : index
    %c0_50 = arith.constant 0 : index
    %c0_51 = arith.constant 0 : index
    %56 = vector.load %arg1[%c6, %c0_50, %c0_51] : memref<8x16x16xbf16, #tpu.memory_space<vmem>>, vector<1x16x16xbf16>
    %57 = vector.shape_cast %56 : vector<1x16x16xbf16> to vector<16x16xbf16>
    %cst_52 = arith.constant dense<0.000000e+00> : vector<16x16xf32>
    %58 = tpu.matmul %1, %57, %cst_52 {dimension_numbers = #tpu.dot_dimension_numbers<[1], [0], [0], [1], [0, 0, 1, 1], [], []>} : vector<16x16xbf16>, vector<16x16xbf16>, vector<16x16xf32> -> vector<16x16xf32>
    %59 = vector.shape_cast %58 : vector<16x16xf32> to vector<2x8x16xf32>
    %60 = arith.truncf %59 : vector<2x8x16xf32> to vector<2x8x16xbf16>
    "tpu.trace_start"() <{level = 10 : i32, message = "fin,fjn->fij"}> : () -> ()
    %cst_53 = arith.constant dense<0.000000e+00> : vector<2x8x8xf32>
    %61 = tpu.matmul %60, %0, %cst_53 {dimension_numbers = #tpu.dot_dimension_numbers<[2], [2], [1], [1], [0, 0, 0, 1, 1, 1], [0], [0]>} : vector<2x8x16xbf16>, vector<2x8x16xbf16>, vector<2x8x8xf32> -> vector<2x8x8xf32>
    "tpu.trace_stop"() : () -> ()
    %c6_54 = arith.constant 6 : index
    %c0_55 = arith.constant 0 : index
    %c0_56 = arith.constant 0 : index
    %c0_57 = arith.constant 0 : index
    %62 = vector.load %arg3[%c6_54, %c0_55, %c0_56, %c0_57] : memref<8x2x8x8xf32, #tpu.memory_space<vmem>>, vector<1x2x8x8xf32>
    %63 = vector.shape_cast %62 : vector<1x2x8x8xf32> to vector<2x8x8xf32>
    %64 = vector.shape_cast %61 : vector<2x8x8xf32> to vector<1x2x8x8xf32>
    tpu.vector_store %arg3[%c6_54, %c0_55, %c0_56, %c0_57], %64 {strides = array<i32>} : memref<8x2x8x8xf32, #tpu.memory_space<vmem>>, vector<1x2x8x8xf32>,
    %c7 = arith.constant 7 : index
    %c0_58 = arith.constant 0 : index
    %c0_59 = arith.constant 0 : index
    %65 = vector.load %arg1[%c7, %c0_58, %c0_59] : memref<8x16x16xbf16, #tpu.memory_space<vmem>>, vector<1x16x16xbf16>
    %66 = vector.shape_cast %65 : vector<1x16x16xbf16> to vector<16x16xbf16>
    %cst_60 = arith.constant dense<0.000000e+00> : vector<16x16xf32>
    %67 = tpu.matmul %1, %66, %cst_60 {dimension_numbers = #tpu.dot_dimension_numbers<[1], [0], [0], [1], [0, 0, 1, 1], [], []>} : vector<16x16xbf16>, vector<16x16xbf16>, vector<16x16xf32> -> vector<16x16xf32>
    %68 = vector.shape_cast %67 : vector<16x16xf32> to vector<2x8x16xf32>
    %69 = arith.truncf %68 : vector<2x8x16xf32> to vector<2x8x16xbf16>
    "tpu.trace_start"() <{level = 10 : i32, message = "fin,fjn->fij"}> : () -> ()
    %cst_61 = arith.constant dense<0.000000e+00> : vector<2x8x8xf32>
    %70 = tpu.matmul %69, %0, %cst_61 {dimension_numbers = #tpu.dot_dimension_numbers<[2], [2], [1], [1], [0, 0, 0, 1, 1, 1], [0], [0]>} : vector<2x8x16xbf16>, vector<2x8x16xbf16>, vector<2x8x8xf32> -> vector<2x8x8xf32>
    "tpu.trace_stop"() : () -> ()
    %c7_62 = arith.constant 7 : index
    %c0_63 = arith.constant 0 : index
    %c0_64 = arith.constant 0 : index
    %c0_65 = arith.constant 0 : index
    %71 = vector.load %arg3[%c7_62, %c0_63, %c0_64, %c0_65] : memref<8x2x8x8xf32, #tpu.memory_space<vmem>>, vector<1x2x8x8xf32>
    %72 = vector.shape_cast %71 : vector<1x2x8x8xf32> to vector<2x8x8xf32>
    %73 = vector.shape_cast %70 : vector<2x8x8xf32> to vector<1x2x8x8xf32>
    tpu.vector_store %arg3[%c7_62, %c0_63, %c0_64, %c0_65], %73 {strides = array<i32>} : memref<8x2x8x8xf32, #tpu.memory_space<vmem>>, vector<1x2x8x8xf32>,
    return
  }
  func.func @transform_0(%arg0: i32) -> (i32, i32, i32) {
    %c0_i32 = arith.constant 0 : i32
    %c0_i32_0 = arith.constant 0 : i32
    %c0_i32_1 = arith.constant 0 : i32
    return %arg0, %c0_i32, %c0_i32_0 : i32, i32, i32
  }
  func.func @transform_1(%arg0: i32) -> (i32, i32, i32) {
    %c0_i32 = arith.constant 0 : i32
    %c0_i32_0 = arith.constant 0 : i32
    %c0_i32_1 = arith.constant 0 : i32
    %c0_i32_2 = arith.constant 0 : i32
    return %c0_i32, %c0_i32_0, %c0_i32_1 : i32, i32, i32
  }
  func.func @transform_2(%arg0: i32) -> (i32, i32, i32, i32) {
    %c0_i32 = arith.constant 0 : i32
    %c0_i32_0 = arith.constant 0 : i32
    %c0_i32_1 = arith.constant 0 : i32
    %c0_i32_2 = arith.constant 0 : i32
    return %arg0, %c0_i32, %c0_i32_0, %c0_i32_1 : i32, i32, i32, i32
  }
}

</mosaic_0001>

<bundles_post_ra>
// kernel: tpu_custom_call.1
= control target key start
LH: loop header
LB: loop body
LE: loop exit
PB: predicated region body
PF: predicated region fallthrough
CT: control target
= control target key end

     0   :  { %7 = vsyncpa [#allocation3], 0  ;;  %s1689_s0 = inlined_call_operand.hbm [shape: bf16[8,16,16], index: 0, kind: input, shape index: {}]   ;;  %s1690_s1 = inlined_call_operand.hbm [shape: bf16[2,8,16], index: 1, kind: input, shape index: {}]   ;;  %s1691_s2 = inlined_call_operand.hbm [shape: f32[8,2,8,8], index: 2, kind: output, shape index: {}]  }
   0x1   :  { %8 = vsyncpa [#allocation6], 0 }
   0x2   :  { %9 = vsyncpa [#allocation4], 0  ;;  %s1512_s9 = smov [#allocation2]  }
   0x3   :  { %s15_s10 = sshll.u32 %s1512_s9, 4  ;;  %s16_s10 = int_to_ptr.vmem [resolvable:$true] %s15_s10 }
   0x4   :  { %s1454_s11 = scalar_lea.vmem %s16_s10, 1024  ;;  %p1459_p1 = scmp.lt.s32.totalorder %s16_s10, %s16_s10 }
   0x5   :  { %p1455_p0 = scmp.ne.s32.totalorder %s16_s10, %s1454_s11  ;;  %p1460_p2 = scmp.lt.s32.totalorder %s1454_s11, %s1454_s11 }
   0x7   :  { %p1461_p3 = por %p1460_p2, %p1459_p1 }
   0x9   :  { %p1462_p4 = pnand %p1461_p3, %p1455_p0 }
   0xb   :  { %1465 = shalt.err (!%p1462_p4)
}
   0xc   :  { %s1513_s12 = smov 64   ;;  %s1514_s13 = smov 4  }
   0xd   :  { %21 = dma.hbm_to_vmem [thread:$0]  %s1689_s0, 1024, %s16_s10, [#allocation3], %s1513_s12, %s1513_s12, %s1514_s13  }
   0xe   :  { %s1515_s16 = smov [#allocation5]  }
   0xf   :  { %s27_s17 = sshll.u32 %s1515_s16, 4  ;;  %s28_s17 = int_to_ptr.vmem [resolvable:$true] %s27_s17 }
  0x10   :  { %s1474_s18 = scalar_lea.vmem %s28_s17, 128  ;;  %p1479_p6 = scmp.lt.s32.totalorder %s28_s17, %s28_s17 }
  0x11   :  { %p1475_p5 = scmp.ne.s32.totalorder %s28_s17, %s1474_s18  ;;  %p1480_p7 = scmp.lt.s32.totalorder %s1474_s18, %s1474_s18 }
  0x13   :  { %p1481_p8 = por %p1480_p7, %p1479_p6 }
  0x15   :  { %p1482_p9 = pnand %p1481_p8, %p1475_p5 }
  0x17   :  { %1485 = shalt.err (!%p1482_p9)
}
  0x18   :  { %33 = dma.hbm_to_vmem [thread:$0]  %s1690_s1, 128, %s28_s17, [#allocation6], %s1513_s12, %s1513_s12, %s1514_s13  }
  0x19   :  { %1506 = dma.done.wait [#allocation3], 1024  }
  0x1a   :  { %1507 = vsyncadd [#allocation3], 4294966272 }
  0x1b   :  { %1508 = dma.done.wait [#allocation6], 128  }
  0x1c   :  { %1509 = vsyncadd [#allocation6], 4294967168  ;;  %v1516_v0 = vmov 0.0   ;;  %vm1517_vm0 = vmmov 0   ;;  %v1437_v1 = vld [vmem:[#allocation2] sm:$0xff]   ;;  %vm56_vm1 = vcmask 130048  }
  0x1d   :  { %1284 = vmatprep.subr.bf16.mxu0 %v1516_v0  ;;  %1286 = vmatprep.mubr.msk.bf16.mxu0 %vm1517_vm0, %v1516_v0  ;;  %v41_v2 = vld [vmem:[#allocation5] sm:$0xf]  ;;  %v42_v3 = vld [vmem:[#allocation5 + $0x4] sm:$0xf]  ;;  %v1439_v8 = vld [vmem:[#allocation2 + $0x8] sm:$0xff]   ;;  %vm195_vm2 = vcmask 64512  }
  0x1e   :  { %1290 = vmatprep.subr.bf16.mxu1 %v1516_v0  ;;  %1292 = vmatprep.mubr.msk.bf16.mxu1 %vm1517_vm0, %v1516_v0  ;;  %v1548_v4 = vcombine.low %v41_v2, %v42_v3  ;;  %v1551_v5 = vsel %vm56_vm1, %v41_v2, 0  ;;  %v1561_v6 = vsel %vm56_vm1, %v42_v3, 0  ;;  %v1440_v22 = vld [vmem:[#allocation2 + $0x10] sm:$0xff]   ;;  %v1441_v37 = vld [vmem:[#allocation2 + $0x18] sm:$0xff]   ;;  %v1442_v52 = vld [vmem:[#allocation2 + $0x20] sm:$0xff]   ;;  %s1518_s0 = smov [#allocation7]  }
  0x1f   :  { %1285 = vmatpush3.bf16.msra.mxu0 %v1437_v1  ;;  %1291 = vmatpush3.bf16.xpose.msra.mxu1 %v1551_v5  ;;  %s1190_s1 = sshll.u32 %s1518_s0, 4  ;;  %s1191_s1 = int_to_ptr.vmem [resolvable:$true] %s1190_s1 }
  0x20   :  { %1296 = vmatprep.subr.bf16.mxu0 %v1516_v0  ;;  %1302 = vmatprep.subr.bf16.mxu1 %v1516_v0  ;;  %s1486_s21 = scalar_lea.vmem %s1191_s1, 2048  ;;  %p1491_p11 = scmp.lt.s32.totalorder %s1191_s1, %s1191_s1 }
  0x21   :  { %p1487_p10 = scmp.ne.s32.totalorder %s1191_s1, %s1486_s21  ;;  %p1492_p12 = scmp.lt.s32.totalorder %s1486_s21, %s1486_s21 }
  0x22   :  { %1287 = vmatmul.mubr.msk.bf16.vlgmr.msra.gmra.mxu0 %vm56_vm1, %v1548_v4 }
  0x23   :  { %1298 = vmatprep.mubr.msk.bf16.mxu0 %vm1517_vm0, %v1516_v0  ;;  %1297 = vmatpush3.bf16.xpose.msra.mxu0 %v1561_v6  ;;  %p1493_p13 = por %p1492_p12, %p1491_p11 }
  0x24   :  { %1308 = vmatprep.subr.bf16.mxu0 %v1516_v0 }
  0x25   :  { %p1494_p0 = pnand %p1493_p13, %p1487_p10 }
  0xe2   :  { %v94_v7 = vpop.f32.mrf.mxu0 }
  0xe3   :  { %v101_v9 = vpack.c.bf16 %v94_v7, %v94_v7  ;;  %v1443_v7 = vld [vmem:[#allocation2 + $0x28] sm:$0xff]  }
  0xe4   :  { %v1288_v10 = vpop.f32.mrf.mxu0 }
  0xe5   :  { %1293 = vmatmul.mubr.msk.bf16.vlgmr.msra.gmra.mxu1 %vm56_vm1, %v101_v9 }
  0xe6   :  { %1303 = vmatpush3.bf16.msra.mxu1 %v1439_v8  ;;  %v97_v11 = vpop.f32.mrf.mxu0  ;;  %1304 = vmatprep.mubr.msk.bf16.mxu1 %vm1517_vm0, %v1516_v0 }
  0xe7   :  { %v102_v12 = vpack.c.bf16 %v97_v11, %v97_v11  ;;  %1314 = vmatprep.subr.bf16.mxu1 %v1516_v0 }
  0xe8   :  { %v1289_v13 = vpop.f32.mrf.mxu0 }
  0xe9   :  { %1299 = vmatmul.mubr.msk.bf16.vlgmr.msra.gmra.mxu0 %vm56_vm1, %v102_v12 }
  0xea   :  { %1309 = vmatpush3.bf16.xpose.msra.mxu0 %v1551_v5  ;;  %1310 = vmatprep.mubr.msk.bf16.mxu0 %vm1517_vm0, %v1516_v0 }
  0xeb   :  { %1320 = vmatprep.subr.bf16.mxu0 %v1516_v0 }
  0xed   :  { %1305 = vmatmul.mubr.msk.bf16.vlgmr.msra.gmra.mxu1 %vm56_vm1, %v1548_v4 }
  0xee   :  { %1315 = vmatpush3.bf16.xpose.msra.mxu1 %v1561_v6  ;;  %1316 = vmatprep.mubr.msk.bf16.mxu1 %vm1517_vm0, %v1516_v0 }
  0xef   :  { %1326 = vmatprep.subr.bf16.mxu1 %v1516_v0 }
 0x1a5   :  { %v143_v14 = vpop.f32.mrf.mxu1 }
 0x1a6   :  { %196 = vst.msk [vmem:[#allocation7] sm:$0xff] %vm195_vm2, %v143_v14 }
 0x1a7   :  { %v1294_v15 = vpop.f32.mrf.mxu1 }
 0x1a9   :  { %v146_v16 = vpop.f32.mrf.mxu1  ;;  %v189_v17 = vpop.f32.mrf.mxu0 }
 0x1aa   :  { %197 = vst.msk [vmem:[#allocation7 + $0x8] sm:$0xff] %vm195_vm2, %v189_v17 }
 0x1ab   :  { %v1295_v18 = vpop.f32.mrf.mxu1  ;;  %v1300_v19 = vpop.f32.mrf.mxu0 }
 0x1ad   :  { %v192_v20 = vpop.f32.mrf.mxu0  ;;  %v241_v21 = vpop.f32.mrf.mxu1 }
 0x1ae   :  { %v248_v23 = vpack.c.bf16 %v241_v21, %v241_v21 }
 0x1af   :  { %v1301_v24 = vpop.f32.mrf.mxu0  ;;  %v1306_v25 = vpop.f32.mrf.mxu1 }
 0x1b0   :  { %1311 = vmatmul.mubr.msk.bf16.vlgmr.msra.gmra.mxu0 %vm56_vm1, %v248_v23 }
 0x1b1   :  { %1321 = vmatpush3.bf16.msra.mxu0 %v1440_v22  ;;  %v244_v26 = vpop.f32.mrf.mxu1  ;;  %1322 = vmatprep.mubr.msk.bf16.mxu0 %vm1517_vm0, %v1516_v0  ;;  %v1444_v22 = vld [vmem:[#allocation2 + $0x30] sm:$0xff]  }
 0x1b2   :  { %v249_v27 = vpack.c.bf16 %v244_v26, %v244_v26  ;;  %1332 = vmatprep.subr.bf16.mxu0 %v1516_v0 }
 0x1b3   :  { %v1307_v28 = vpop.f32.mrf.mxu1 }
 0x1b4   :  { %1317 = vmatmul.mubr.msk.bf16.vlgmr.msra.gmra.mxu1 %vm56_vm1, %v249_v27 }
 0x1b5   :  { %1327 = vmatpush3.bf16.xpose.msra.mxu1 %v1551_v5  ;;  %1328 = vmatprep.mubr.msk.bf16.mxu1 %vm1517_vm0, %v1516_v0 }
 0x1b6   :  { %1338 = vmatprep.subr.bf16.mxu1 %v1516_v0 }
 0x1b8   :  { %1323 = vmatmul.mubr.msk.bf16.vlgmr.msra.gmra.mxu0 %vm56_vm1, %v1548_v4 }
 0x1b9   :  { %1333 = vmatpush3.bf16.xpose.msra.mxu0 %v1561_v6  ;;  %1334 = vmatprep.mubr.msk.bf16.mxu0 %vm1517_vm0, %v1516_v0 }
 0x1ba   :  { %1344 = vmatprep.subr.bf16.mxu0 %v1516_v0 }
 0x270   :  { %v287_v29 = vpop.f32.mrf.mxu0 }
 0x271   :  { %337 = vst.msk [vmem:[#allocation7 + $0x10] sm:$0xff] %vm195_vm2, %v287_v29 }
 0x272   :  { %v1312_v30 = vpop.f32.mrf.mxu0 }
 0x274   :  { %v290_v31 = vpop.f32.mrf.mxu0  ;;  %v330_v32 = vpop.f32.mrf.mxu1 }
 0x275   :  { %338 = vst.msk [vmem:[#allocation7 + $0x18] sm:$0xff] %vm195_vm2, %v330_v32 }
 0x276   :  { %v1313_v33 = vpop.f32.mrf.mxu0  ;;  %v1318_v34 = vpop.f32.mrf.mxu1 }
 0x278   :  { %v333_v35 = vpop.f32.mrf.mxu1  ;;  %v382_v36 = vpop.f32.mrf.mxu0 }
 0x279   :  { %v389_v38 = vpack.c.bf16 %v382_v36, %v382_v36 }
 0x27a   :  { %v1319_v39 = vpop.f32.mrf.mxu1  ;;  %v1324_v40 = vpop.f32.mrf.mxu0 }
 0x27b   :  { %1329 = vmatmul.mubr.msk.bf16.vlgmr.msra.gmra.mxu1 %vm56_vm1, %v389_v38 }
 0x27c   :  { %1339 = vmatpush3.bf16.msra.mxu1 %v1441_v37  ;;  %v385_v41 = vpop.f32.mrf.mxu0  ;;  %1340 = vmatprep.mubr.msk.bf16.mxu1 %vm1517_vm0, %v1516_v0  ;;  %v1445_v37 = vld [vmem:[#allocation2 + $0x38] sm:$0xff]  }
 0x27d   :  { %v390_v42 = vpack.c.bf16 %v385_v41, %v385_v41  ;;  %1350 = vmatprep.subr.bf16.mxu1 %v1516_v0 }
 0x27e   :  { %v1325_v43 = vpop.f32.mrf.mxu0 }
 0x27f   :  { %1335 = vmatmul.mubr.msk.bf16.vlgmr.msra.gmra.mxu0 %vm56_vm1, %v390_v42 }
 0x280   :  { %1345 = vmatpush3.bf16.xpose.msra.mxu0 %v1551_v5  ;;  %1346 = vmatprep.mubr.msk.bf16.mxu0 %vm1517_vm0, %v1516_v0 }
 0x281   :  { %1356 = vmatprep.subr.bf16.mxu0 %v1516_v0 }
 0x283   :  { %1341 = vmatmul.mubr.msk.bf16.vlgmr.msra.gmra.mxu1 %vm56_vm1, %v1548_v4 }
 0x284   :  { %1351 = vmatpush3.bf16.xpose.msra.mxu1 %v1561_v6  ;;  %1352 = vmatprep.mubr.msk.bf16.mxu1 %vm1517_vm0, %v1516_v0 }
 0x285   :  { %1362 = vmatprep.subr.bf16.mxu1 %v1516_v0 }
 0x33b   :  { %v428_v44 = vpop.f32.mrf.mxu1 }
 0x33c   :  { %478 = vst.msk [vmem:[#allocation7 + $0x20] sm:$0xff] %vm195_vm2, %v428_v44 }
 0x33d   :  { %v1330_v45 = vpop.f32.mrf.mxu1 }
 0x33f   :  { %v431_v46 = vpop.f32.mrf.mxu1  ;;  %v471_v47 = vpop.f32.mrf.mxu0 }
 0x340   :  { %479 = vst.msk [vmem:[#allocation7 + $0x28] sm:$0xff] %vm195_vm2, %v471_v47 }
 0x341   :  { %v1331_v48 = vpop.f32.mrf.mxu1  ;;  %v1336_v49 = vpop.f32.mrf.mxu0 }
 0x343   :  { %v474_v50 = vpop.f32.mrf.mxu0  ;;  %v523_v51 = vpop.f32.mrf.mxu1 }
 0x344   :  { %v530_v53 = vpack.c.bf16 %v523_v51, %v523_v51 }
 0x345   :  { %v1337_v54 = vpop.f32.mrf.mxu0  ;;  %v1342_v55 = vpop.f32.mrf.mxu1 }
 0x346   :  { %1347 = vmatmul.mubr.msk.bf16.vlgmr.msra.gmra.mxu0 %vm56_vm1, %v530_v53 }
 0x347   :  { %1357 = vmatpush3.bf16.msra.mxu0 %v1442_v52  ;;  %v526_v56 = vpop.f32.mrf.mxu1  ;;  %1358 = vmatprep.mubr.msk.bf16.mxu0 %vm1517_vm0, %v1516_v0 }
 0x348   :  { %v531_v57 = vpack.c.bf16 %v526_v56, %v526_v56  ;;  %1368 = vmatprep.subr.bf16.mxu0 %v1516_v0 }
 0x349   :  { %v1343_v58 = vpop.f32.mrf.mxu1 }
 0x34a   :  { %1353 = vmatmul.mubr.msk.bf16.vlgmr.msra.gmra.mxu1 %vm56_vm1, %v531_v57 }
 0x34b   :  { %1363 = vmatpush3.bf16.xpose.msra.mxu1 %v1551_v5  ;;  %1364 = vmatprep.mubr.msk.bf16.mxu1 %vm1517_vm0, %v1516_v0 }
 0x34c   :  { %1374 = vmatprep.subr.bf16.mxu1 %v1516_v0 }
 0x34e   :  { %1359 = vmatmul.mubr.msk.bf16.vlgmr.msra.gmra.mxu0 %vm56_vm1, %v1548_v4 }
 0x34f   :  { %1369 = vmatpush3.bf16.xpose.msra.mxu0 %v1561_v6  ;;  %1370 = vmatprep.mubr.msk.bf16.mxu0 %vm1517_vm0, %v1516_v0 }
 0x350   :  { %1380 = vmatprep.subr.bf16.mxu0 %v1516_v0 }
 0x406   :  { %v569_v59 = vpop.f32.mrf.mxu0 }
 0x407   :  { %619 = vst.msk [vmem:[#allocation7 + $0x30] sm:$0xff] %vm195_vm2, %v569_v59 }
 0x408   :  { %v1348_v60 = vpop.f32.mrf.mxu0 }
 0x40a   :  { %v572_v61 = vpop.f32.mrf.mxu0  ;;  %v612_v62 = vpop.f32.mrf.mxu1 }
 0x40b   :  { %620 = vst.msk [vmem:[#allocation7 + $0x38] sm:$0xff] %vm195_vm2, %v612_v62 }
 0x40c   :  { %v1349_v63 = vpop.f32.mrf.mxu0  ;;  %v1354_v1 = vpop.f32.mrf.mxu1 }
 0x40e   :  { %v615_v2 = vpop.f32.mrf.mxu1  ;;  %v664_v3 = vpop.f32.mrf.mxu0 }
 0x40f   :  { %v671_v8 = vpack.c.bf16 %v664_v3, %v664_v3 }
 0x410   :  { %v1355_v9 = vpop.f32.mrf.mxu1  ;;  %v1360_v10 = vpop.f32.mrf.mxu0 }
 0x411   :  { %1365 = vmatmul.mubr.msk.bf16.vlgmr.msra.gmra.mxu1 %vm56_vm1, %v671_v8 }
 0x412   :  { %1375 = vmatpush3.bf16.msra.mxu1 %v1443_v7  ;;  %v667_v11 = vpop.f32.mrf.mxu0  ;;  %1376 = vmatprep.mubr.msk.bf16.mxu1 %vm1517_vm0, %v1516_v0 }
 0x413   :  { %v672_v12 = vpack.c.bf16 %v667_v11, %v667_v11  ;;  %1386 = vmatprep.subr.bf16.mxu1 %v1516_v0 }
 0x414   :  { %v1361_v13 = vpop.f32.mrf.mxu0 }
 0x415   :  { %1371 = vmatmul.mubr.msk.bf16.vlgmr.msra.gmra.mxu0 %vm56_vm1, %v672_v12 }
 0x416   :  { %1381 = vmatpush3.bf16.xpose.msra.mxu0 %v1551_v5  ;;  %1382 = vmatprep.mubr.msk.bf16.mxu0 %vm1517_vm0, %v1516_v0 }
 0x417   :  { %1392 = vmatprep.subr.bf16.mxu0 %v1516_v0 }
 0x419   :  { %1377 = vmatmul.mubr.msk.bf16.vlgmr.msra.gmra.mxu1 %vm56_vm1, %v1548_v4 }
 0x41a   :  { %1387 = vmatpush3.bf16.xpose.msra.mxu1 %v1561_v6  ;;  %1388 = vmatprep.mubr.msk.bf16.mxu1 %vm1517_vm0, %v1516_v0 }
 0x41b   :  { %1398 = vmatprep.subr.bf16.mxu1 %v1516_v0 }
 0x4d1   :  { %v710_v14 = vpop.f32.mrf.mxu1 }
 0x4d2   :  { %760 = vst.msk [vmem:[#allocation7 + $0x40] sm:$0xff] %vm195_vm2, %v710_v14 }
 0x4d3   :  { %v1366_v15 = vpop.f32.mrf.mxu1 }
 0x4d5   :  { %v713_v16 = vpop.f32.mrf.mxu1  ;;  %v753_v17 = vpop.f32.mrf.mxu0 }
 0x4d6   :  { %761 = vst.msk [vmem:[#allocation7 + $0x48] sm:$0xff] %vm195_vm2, %v753_v17 }
 0x4d7   :  { %v1367_v18 = vpop.f32.mrf.mxu1  ;;  %v1372_v19 = vpop.f32.mrf.mxu0 }
 0x4d9   :  { %v756_v20 = vpop.f32.mrf.mxu0  ;;  %v805_v21 = vpop.f32.mrf.mxu1 }
 0x4da   :  { %v812_v23 = vpack.c.bf16 %v805_v21, %v805_v21 }
 0x4db   :  { %v1373_v24 = vpop.f32.mrf.mxu0  ;;  %v1378_v25 = vpop.f32.mrf.mxu1 }
 0x4dc   :  { %1383 = vmatmul.mubr.msk.bf16.vlgmr.msra.gmra.mxu0 %vm56_vm1, %v812_v23 }
 0x4dd   :  { %1393 = vmatpush3.bf16.msra.mxu0 %v1444_v22  ;;  %v808_v26 = vpop.f32.mrf.mxu1  ;;  %1394 = vmatprep.mubr.msk.bf16.mxu0 %vm1517_vm0, %v1516_v0 }
 0x4de   :  { %v813_v27 = vpack.c.bf16 %v808_v26, %v808_v26  ;;  %1404 = vmatprep.subr.bf16.mxu0 %v1516_v0 }
 0x4df   :  { %v1379_v28 = vpop.f32.mrf.mxu1 }
 0x4e0   :  { %1389 = vmatmul.mubr.msk.bf16.vlgmr.msra.gmra.mxu1 %vm56_vm1, %v813_v27 }
 0x4e1   :  { %1399 = vmatpush3.bf16.xpose.msra.mxu1 %v1551_v5  ;;  %1400 = vmatprep.mubr.msk.bf16.mxu1 %vm1517_vm0, %v1516_v0 }
 0x4e2   :  { %1410 = vmatprep.subr.bf16.mxu1 %v1516_v0 }
 0x4e4   :  { %1395 = vmatmul.mubr.msk.bf16.vlgmr.msra.gmra.mxu0 %vm56_vm1, %v1548_v4 }
 0x4e5   :  { %1405 = vmatpush3.bf16.xpose.msra.mxu0 %v1561_v6  ;;  %1406 = vmatprep.mubr.msk.bf16.mxu0 %vm1517_vm0, %v1516_v0 }
 0x4e6   :  { %1416 = vmatprep.subr.bf16.mxu0 %v1516_v0 }
 0x59c   :  { %v851_v29 = vpop.f32.mrf.mxu0 }
 0x59d   :  { %901 = vst.msk [vmem:[#allocation7 + $0x50] sm:$0xff] %vm195_vm2, %v851_v29 }
 0x59e   :  { %v1384_v30 = vpop.f32.mrf.mxu0 }
 0x5a0   :  { %v854_v31 = vpop.f32.mrf.mxu0  ;;  %v894_v32 = vpop.f32.mrf.mxu1 }
 0x5a1   :  { %902 = vst.msk [vmem:[#allocation7 + $0x58] sm:$0xff] %vm195_vm2, %v894_v32 }
 0x5a2   :  { %v1385_v33 = vpop.f32.mrf.mxu0  ;;  %v1390_v34 = vpop.f32.mrf.mxu1 }
 0x5a4   :  { %v897_v35 = vpop.f32.mrf.mxu1  ;;  %v946_v36 = vpop.f32.mrf.mxu0 }
 0x5a5   :  { %v953_v38 = vpack.c.bf16 %v946_v36, %v946_v36 }
 0x5a6   :  { %v1391_v39 = vpop.f32.mrf.mxu1  ;;  %v1396_v40 = vpop.f32.mrf.mxu0 }
 0x5a7   :  { %1401 = vmatmul.mubr.msk.bf16.vlgmr.msra.gmra.mxu1 %vm56_vm1, %v953_v38 }
 0x5a8   :  { %1411 = vmatpush3.bf16.msra.mxu1 %v1445_v37  ;;  %v949_v41 = vpop.f32.mrf.mxu0  ;;  %1412 = vmatprep.mubr.msk.bf16.mxu1 %vm1517_vm0, %v1516_v0 }
 0x5a9   :  { %v954_v42 = vpack.c.bf16 %v949_v41, %v949_v41  ;;  %1422 = vmatprep.subr.bf16.mxu1 %v1516_v0 }
 0x5aa   :  { %v1397_v43 = vpop.f32.mrf.mxu0 }
 0x5ab   :  { %1407 = vmatmul.mubr.msk.bf16.vlgmr.msra.gmra.mxu0 %vm56_vm1, %v954_v42 }
 0x5ac   :  { %1417 = vmatpush3.bf16.xpose.msra.mxu0 %v1551_v5  ;;  %1418 = vmatprep.mubr.msk.bf16.mxu0 %vm1517_vm0, %v1516_v0 }
 0x5af   :  { %1413 = vmatmul.mubr.msk.bf16.vlgmr.msra.gmra.mxu1 %vm56_vm1, %v1548_v4 }
 0x5b0   :  { %1423 = vmatpush3.bf16.xpose.msra.mxu1 %v1561_v6  ;;  %1424 = vmatprep.mubr.msk.bf16.mxu1 %vm1517_vm0, %v1516_v0 }
 0x667   :  { %v992_v44 = vpop.f32.mrf.mxu1 }
 0x668   :  { %1042 = vst.msk [vmem:[#allocation7 + $0x60] sm:$0xff] %vm195_vm2, %v992_v44 }
 0x669   :  { %v1402_v45 = vpop.f32.mrf.mxu1 }
 0x66b   :  { %v995_v46 = vpop.f32.mrf.mxu1  ;;  %v1035_v47 = vpop.f32.mrf.mxu0 }
 0x66c   :  { %1043 = vst.msk [vmem:[#allocation7 + $0x68] sm:$0xff] %vm195_vm2, %v1035_v47 }
 0x66d   :  { %v1403_v5 = vpop.f32.mrf.mxu1  ;;  %v1408_v48 = vpop.f32.mrf.mxu0 }
 0x66f   :  { %v1038_v49 = vpop.f32.mrf.mxu0  ;;  %v1087_v50 = vpop.f32.mrf.mxu1 }
 0x670   :  { %v1094_v51 = vpack.c.bf16 %v1087_v50, %v1087_v50 }
 0x671   :  { %v1409_v52 = vpop.f32.mrf.mxu0  ;;  %v1414_v4 = vpop.f32.mrf.mxu1 }
 0x672   :  { %1419 = vmatmul.mubr.msk.bf16.vlgmr.msra.gmra.mxu0 %vm56_vm1, %v1094_v51 }
 0x673   :  { %v1090_v6 = vpop.f32.mrf.mxu1 }
 0x674   :  { %v1095_v53 = vpack.c.bf16 %v1090_v6, %v1090_v6 }
 0x675   :  { %v1415_v0 = vpop.f32.mrf.mxu1 }
 0x676   :  { %1425 = vmatmul.mubr.msk.bf16.vlgmr.msra.gmra.mxu1 %vm56_vm1, %v1095_v53 }
 0x732   :  { %v1133_v54 = vpop.f32.mrf.mxu0 }
 0x733   :  { %1183 = vst.msk [vmem:[#allocation7 + $0x70] sm:$0xff] %vm195_vm2, %v1133_v54 }
 0x734   :  { %v1420_v55 = vpop.f32.mrf.mxu0 }
 0x736   :  { %v1136_v56 = vpop.f32.mrf.mxu0  ;;  %v1176_v57 = vpop.f32.mrf.mxu1 }
 0x737   :  { %1184 = vst.msk [vmem:[#allocation7 + $0x78] sm:$0xff] %vm195_vm2, %v1176_v57 }
 0x738   :  { %v1421_v58 = vpop.f32.mrf.mxu0  ;;  %v1426_v59 = vpop.f32.mrf.mxu1 }
 0x739   :  { %1497 = shalt.err (!%p1494_p0)
}
 0x73a   :  { %s1519_s22 = smov 128   ;;  %s1520_s23 = smov 8   ;;  %v1179_v60 = vpop.f32.mrf.mxu1 }
 0x73b   :  { %1196 = dma.vmem_to_hbm [thread:$0]  %s1191_s1, 2048, %s1691_s2, [#allocation4], %s1519_s22, %s1519_s22, %s1520_s23  }
 0x73c   :  { %v1427_v61 = vpop.f32.mrf.mxu1 }
 0x73d   :  { %1510 = dma.done.wait [#allocation4], 2048  }
 0x73e   :  { %1511 = vsyncadd [#allocation4], 4294965248 }
 0x73f   :  { %1200 = vsyncpa [#allocation3], 1 }
 0x740   :  { %1201 = vsyncpa [#allocation6], 1 }
 0x741   :  { %1202 = vsyncpa [#allocation4], 1 }

</bundles_post_ra>
